<compile_context>
chip_gen: v6e
topology: v6e:2x2x1
jax: 0.10.0
libtpu: 0.0.40
codegen_flags: <defaults>
</compile_context>

<pallas_src>
import math

import jax
import jax.numpy as jnp
from jax.experimental import pallas as pl
from jax.experimental.pallas import tpu as pltpu


# ---------------------------------------------------------------------------
# Parameter / buffer construction (plain JAX glue, mirrors the PyTorch init)
# ---------------------------------------------------------------------------
def make_token_conv_weight(key, c_in, d_model, kernel_size=3):
    """Conv1d weight, kaiming_normal_(fan_in, leaky_relu) like the PyTorch init.

    PyTorch layout is (d_model, c_in, k); we return (k, c_in, d_model) so that
    w[k] is the (c_in, d_model) matrix applied to the input shifted by k - 1.
    """
    fan_in = c_in * kernel_size
    gain = math.sqrt(2.0 / (1.0 + 0.01 ** 2))  # leaky_relu, negative_slope=0.01
    std = gain / math.sqrt(fan_in)
    w_torch_layout = std * jax.random.normal(
        key, (d_model, c_in, kernel_size), dtype=jnp.float32
    )
    return jnp.transpose(w_torch_layout, (2, 1, 0))  # (k, c_in, d_model)


def make_positional_embedding(seq_len, d_model):
    """pe[t, 2i] = sin(t * div[i]); pe[t, 2i+1] = cos(t * div[i]) (even d_model)."""
    position = jnp.arange(seq_len, dtype=jnp.float32)[:, None]              # (L, 1)
    div_term = jnp.exp(
        jnp.arange(0, d_model, 2, dtype=jnp.float32)
        * (-math.log(10000.0) / d_model)
    )                                                                        # (d/2,)
    ang = position * div_term                                                # (L, d/2)
    pe = jnp.zeros((seq_len, d_model), dtype=jnp.float32)
    pe = pe.at[:, 0::2].set(jnp.sin(ang))
    pe = pe.at[:, 1::2].set(jnp.cos(ang))
    return pe


# ---------------------------------------------------------------------------
# Pallas kernels
# ---------------------------------------------------------------------------
def _tap_matmuls(x, x_prev, x_next, w_ref):
    """Three small-K matmuls accumulated in f32 (K padded to 128 by MXU anyway)."""
    y = jnp.einsum("btc,cd->btd", x_prev, w_ref[0],
                   preferred_element_type=jnp.float32)
    y = y + jnp.einsum("btc,cd->btd", x, w_ref[1],
                       preferred_element_type=jnp.float32)
    y = y + jnp.einsum("btc,cd->btd", x_next, w_ref[2],
                       preferred_element_type=jnp.float32)
    return y


def _kernel_no_halo(x_ref, w_ref, pe_ref, out_ref):
    # x_ref:   (TB, L, c_in)    whole sequence -> wrap rows already in the tile
    # w_ref:   (3, c_in, d_pad)
    # pe_ref:  (L, d_pad)
    # out_ref: (TB, L, d_pad)
    x = x_ref[...]
    L = x.shape[1]
    x_prev = pltpu.roll(x, shift=1, axis=1)        # x_prev[:, t] = x[:, (t-1) % L]
    x_next = pltpu.roll(x, shift=L - 1, axis=1)    # x_next[:, t] = x[:, (t+1) % L]
    y = _tap_matmuls(x, x_prev, x_next, w_ref)
    out_ref[...] = (y + pe_ref[...][None, :, :]).astype(out_ref.dtype)


def _kernel_halo(x_ref, halo_ref, w_ref, pe_ref, out_ref):
    # x_ref:    (TB, TL, c_in)      one L tile
    # halo_ref: (1, TB, 2, c_in)    [x[(off-1) mod L], x[(off+TL) mod L]]
    # w_ref:    (3, c_in, d_pad)
    # pe_ref:   (TL, d_pad)
    # out_ref:  (TB, TL, d_pad)
    x = x_ref[...]
    tl = x.shape[1]
    halo = halo_ref[0]                                         # (TB, 2, c_in)
    t = jax.lax.broadcasted_iota(jnp.int32, x.shape, 1)
    # roll + single-row fix-up (no unaligned slice/concat temporaries)
    x_prev = jnp.where(t == 0, halo[:, 0:1, :],
                       pltpu.roll(x, shift=1, axis=1))
    x_next = jnp.where(t == tl - 1, halo[:, 1:2, :],
                       pltpu.roll(x, shift=tl - 1, axis=1))
    y = _tap_matmuls(x, x_prev, x_next, w_ref)
    out_ref[...] = (y + pe_ref[...][None, :, :]).astype(out_ref.dtype)


# ---------------------------------------------------------------------------
# Wrapper
# ---------------------------------------------------------------------------
def _largest_divisor_leq(n, cap, multiple_of=1):
    cap = max(1, min(n, cap))
    for d in range(cap, 0, -1):
        if n % d == 0 and d % multiple_of == 0:
            return d
    return None


def data_embedding(x, conv_w, pe, *, out_dtype=jnp.float32, max_rows=None,
                   vmem_budget_bytes=24 * 1024 * 1024):
    """x: (B, L, c_in) f32, conv_w: (3, c_in, d_model), pe: (L, d_model)
    -> (B, L, d_model) in out_dtype (use jnp.bfloat16 if downstream is bf16)."""
    B, L, c_in = x.shape
    k, c_in2, d_model = conv_w.shape
    assert k == 3 and c_in2 == c_in
    assert pe.shape == (L, d_model)

    # Lane-dense output: pad d_model to a multiple of 128 (sliced off below).
    d_pad = max(128, ((d_model + 127) // 128) * 128)
    if d_pad != d_model:
        conv_w = jnp.pad(conv_w, ((0, 0), (0, 0), (0, d_pad - d_model)))
        pe = jnp.pad(pe, ((0, 0), (0, d_pad - d_model)))

    # Row budget (TB*TL): ~4 live f32 copies of rows x d_pad (double-buffered
    # out, pe tile, x) kept under ~24 MiB -> safe on v7x's 64 MiB VMEM.
    rows_cap = max(8, vmem_budget_bytes // (16 * d_pad))
    if max_rows is not None:
        rows_cap = min(rows_cap, max_rows)

    # L tile: the whole sequence whenever it fits (no halo needed); otherwise
    # the largest multiple-of-8 divisor of L (BlockSpec sublane constraint).
    if L <= rows_cap:
        TL = L
    else:
        TL = _largest_divisor_leq(L, rows_cap, multiple_of=8) or L
    num_l = L // TL

    # Batch tile: fill the remaining row budget, but keep >= 2 grid steps when
    # possible so both v7x TensorCores get work.
    tb_cap = max(1, rows_cap // TL)
    TB = _largest_divisor_leq(B, tb_cap)
    if num_l * (B // TB) == 1 and B > 1:
        TB = _largest_divisor_leq(B, max(1, B // 2))
    num_b = B // TB

    grid = (num_l, num_b)
    x_spec = pl.BlockSpec((TB, TL, c_in), lambda j, b: (b, j, 0))
    w_spec = pl.BlockSpec((3, c_in, d_pad), lambda j, b: (0, 0, 0))   # resident
    pe_spec = pl.BlockSpec((TL, d_pad), lambda j, b: (j, 0))          # reused over b
    out_spec = pl.BlockSpec((TB, TL, d_pad), lambda j, b: (b, j, 0))

    # Scoped VMEM limit from a rough working-set estimate (bounded for v7x).
    est = 4 * (2 * TB * TL * (c_in + d_pad) + 2 * TL * d_pad
               + 3 * c_in * d_pad + 4 * TB * c_in)
    vmem_limit = int(min(96 * 1024 * 1024, max(32 * 1024 * 1024, 2 * est)))
    cparams = pltpu.CompilerParams(
        dimension_semantics=("parallel", "parallel"),
        vmem_limit_bytes=vmem_limit,
    )
    out_shape = jax.ShapeDtypeStruct((B, L, d_pad), out_dtype)

    if num_l == 1:
        out = pl.pallas_call(
            _kernel_no_halo,
            out_shape=out_shape,
            grid_spec=pltpu.PrefetchScalarGridSpec(
                num_scalar_prefetch=0,
                grid=grid,
                in_specs=[x_spec, w_spec, pe_spec],
                out_specs=out_spec,
            ),
            compiler_params=cparams,
        )(x, conv_w, pe)
    else:
        # Wrap rows for each L tile: halo[j, b, 0] = x[b, (j*TL - 1) % L],
        # halo[j, b, 1] = x[b, (j*TL + TL) % L].  (Only needed for long L.)
        offs = jnp.arange(num_l, dtype=jnp.int32) * TL
        left = jnp.take(x, (offs - 1) % L, axis=1)     # (B, num_l, c_in)
        right = jnp.take(x, (offs + TL) % L, axis=1)   # (B, num_l, c_in)
        halo = jnp.transpose(jnp.stack([left, right], axis=2), (1, 0, 2, 3))
        halo_spec = pl.BlockSpec((1, TB, 2, c_in), lambda j, b: (j, b, 0, 0))
        out = pl.pallas_call(
            _kernel_halo,
            out_shape=out_shape,
            grid_spec=pltpu.PrefetchScalarGridSpec(
                num_scalar_prefetch=0,
                grid=grid,
                in_specs=[x_spec, halo_spec, w_spec, pe_spec],
                out_specs=out_spec,
            ),
            compiler_params=cparams,
        )(x, halo, conv_w, pe)

    if d_pad != d_model:
        out = out[:, :, :d_model]
    return out


# ---------------------------------------------------------------------------
# Reference (plain JAX) for a correctness check
# ---------------------------------------------------------------------------
def data_embedding_ref(x, conv_w, pe):
    B, L, c_in = x.shape
    xpad = jnp.concatenate([x[:, -1:, :], x, x[:, :1, :]], axis=1)
    y = sum(
        jnp.einsum(
            "blc,cd->bld",
            xpad[:, kk:kk + L, :],
            conv_w[kk],
            precision=jax.lax.Precision.HIGHEST,
        )
        for kk in range(3)
    )
    return y + pe[None, :, :]


if __name__ == "__main__":
    # Small deterministic config (typical Informer-ish shapes scaled down):
    # d_model=128 keeps the output lane-dense without padding.
    B, L, c_in, d_model = 4, 96, 7, 128

    key = jax.random.PRNGKey(0)
    k_x, k_w = jax.random.split(key)

    x = jax.random.normal(k_x, (B, L, c_in), dtype=jnp.float32)
    conv_w = make_token_conv_weight(k_w, c_in, d_model)
    pe = make_positional_embedding(L, d_model)

    ref = data_embedding_ref(x, conv_w, pe)

    # Main path: single L tile (no halo), batch-tiled grid of 2 steps.
    out = jax.block_until_ready(data_embedding(x, conv_w, pe))
    assert out.shape == (B, L, d_model)
    # Tolerance covers possible bf16-pass MXU lowering of the f32 matmul.
    assert jnp.allclose(out, ref, atol=2e-2, rtol=2e-2), "mismatch (no-halo path)"

    # Long-L path: force L tiling so the halo + roll/fix-up kernel is exercised.
    out_tiled = jax.block_until_ready(data_embedding(x, conv_w, pe, max_rows=32))
    assert jnp.allclose(out_tiled, ref, atol=2e-2, rtol=2e-2), "mismatch (halo path)"

    print("KERNEL_OK")
</pallas_src>

<mosaic_0001>
module attributes {stable_mosaic.version = 11 : i64} {
  func.func @_kernel_no_halo(%arg0: i32, %arg1: i32, %arg2: memref<2x96x7xf32, #tpu.memory_space<vmem>>, %arg3: memref<3x7x128xf32, #tpu.memory_space<vmem>>, %arg4: memref<96x128xf32, #tpu.memory_space<vmem>>, %arg5: memref<2x96x128xf32, #tpu.memory_space<vmem>>) attributes {dimension_semantics = [#tpu.dimension_semantics<parallel>, #tpu.dimension_semantics<parallel>], iteration_bounds = array<i64: 1, 2>, scalar_prefetch = 0 : i64, scratch_operands = 0 : i64, tpu.core_type = #tpu.core_type<tc>, window_params = [{transform_indices = @transform_0, window_bounds = array<i64: 2, 96, 7>}, {pipeline_mode = #tpu.pipeline_mode<synchronous>, transform_indices = @transform_1, window_bounds = array<i64: 3, 7, 128>}, {transform_indices = @transform_2, window_bounds = array<i64: 96, 128>}, {transform_indices = @transform_3, window_bounds = array<i64: 2, 96, 128>}]} {
    %c0 = arith.constant 0 : index
    %c0_0 = arith.constant 0 : index
    %c0_1 = arith.constant 0 : index
    %0 = vector.load %arg2[%c0, %c0_0, %c0_1] : memref<2x96x7xf32, #tpu.memory_space<vmem>>, vector<2x96x7xf32>
    %c1_i32 = arith.constant 1 : i32
    %1 = tpu.dynamic_rotate %0 by %c1_i32 dim 1 : vector<2x96x7xf32>, i32 -> vector<2x96x7xf32>
    %c95_i32 = arith.constant 95 : i32
    %2 = tpu.dynamic_rotate %0 by %c95_i32 dim 1 : vector<2x96x7xf32>, i32 -> vector<2x96x7xf32>
    %c0_2 = arith.constant 0 : index
    %c0_3 = arith.constant 0 : index
    %c0_4 = arith.constant 0 : index
    %3 = vector.load %arg3[%c0_2, %c0_3, %c0_4] : memref<3x7x128xf32, #tpu.memory_space<vmem>>, vector<1x7x128xf32>
    %4 = vector.shape_cast %3 : vector<1x7x128xf32> to vector<7x128xf32>
    "tpu.trace_start"() <{level = 10 : i32, message = "btc,cd->btd"}> : () -> ()
    %cst = arith.constant dense<0.000000e+00> : vector<2x96x128xf32>
    %5 = tpu.matmul %1, %4, %cst {dimension_numbers = #tpu.dot_dimension_numbers<[2], [0], [0, 1], [1], [0, 0, 0, 1, 1, 1], [], []>} : vector<2x96x7xf32>, vector<7x128xf32>, vector<2x96x128xf32> -> vector<2x96x128xf32>
    "tpu.trace_stop"() : () -> ()
    %c1 = arith.constant 1 : index
    %c0_5 = arith.constant 0 : index
    %c0_6 = arith.constant 0 : index
    %6 = vector.load %arg3[%c1, %c0_5, %c0_6] : memref<3x7x128xf32, #tpu.memory_space<vmem>>, vector<1x7x128xf32>
    %7 = vector.shape_cast %6 : vector<1x7x128xf32> to vector<7x128xf32>
    "tpu.trace_start"() <{level = 10 : i32, message = "btc,cd->btd"}> : () -> ()
    %cst_7 = arith.constant dense<0.000000e+00> : vector<2x96x128xf32>
    %8 = tpu.matmul %0, %7, %cst_7 {dimension_numbers = #tpu.dot_dimension_numbers<[2], [0], [0, 1], [1], [0, 0, 0, 1, 1, 1], [], []>} : vector<2x96x7xf32>, vector<7x128xf32>, vector<2x96x128xf32> -> vector<2x96x128xf32>
    "tpu.trace_stop"() : () -> ()
    %9 = arith.addf %5, %8 : vector<2x96x128xf32>
    %c2 = arith.constant 2 : index
    %c0_8 = arith.constant 0 : index
    %c0_9 = arith.constant 0 : index
    %10 = vector.load %arg3[%c2, %c0_8, %c0_9] : memref<3x7x128xf32, #tpu.memory_space<vmem>>, vector<1x7x128xf32>
    %11 = vector.shape_cast %10 : vector<1x7x128xf32> to vector<7x128xf32>
    "tpu.trace_start"() <{level = 10 : i32, message = "btc,cd->btd"}> : () -> ()
    %cst_10 = arith.constant dense<0.000000e+00> : vector<2x96x128xf32>
    %12 = tpu.matmul %2, %11, %cst_10 {dimension_numbers = #tpu.dot_dimension_numbers<[2], [0], [0, 1], [1], [0, 0, 0, 1, 1, 1], [], []>} : vector<2x96x7xf32>, vector<7x128xf32>, vector<2x96x128xf32> -> vector<2x96x128xf32>
    "tpu.trace_stop"() : () -> ()
    %13 = arith.addf %9, %12 : vector<2x96x128xf32>
    %c0_11 = arith.constant 0 : index
    %c0_12 = arith.constant 0 : index
    %14 = vector.load %arg4[%c0_11, %c0_12] : memref<96x128xf32, #tpu.memory_space<vmem>>, vector<96x128xf32>
    %15 = vector.shape_cast %14 : vector<96x128xf32> to vector<1x96x128xf32>
    %16 = vector.broadcast %15 : vector<1x96x128xf32> to vector<2x96x128xf32>
    %17 = arith.addf %13, %16 : vector<2x96x128xf32>
    %c0_13 = arith.constant 0 : index
    %c0_14 = arith.constant 0 : index
    %c0_15 = arith.constant 0 : index
    %18 = vector.load %arg5[%c0_13, %c0_14, %c0_15] : memref<2x96x128xf32, #tpu.memory_space<vmem>>, vector<2x96x128xf32>
    tpu.vector_store %arg5[%c0_13, %c0_14, %c0_15], %17 {strides = array<i32>} : memref<2x96x128xf32, #tpu.memory_space<vmem>>, vector<2x96x128xf32>,
    return
  }
  func.func @transform_0(%arg0: i32, %arg1: i32) -> (i32, i32, i32) {
    %c0_i32 = arith.constant 0 : i32
    %c0_i32_0 = arith.constant 0 : i32
    return %arg1, %arg0, %c0_i32 : i32, i32, i32
  }
  func.func @transform_1(%arg0: i32, %arg1: i32) -> (i32, i32, i32) {
    %c0_i32 = arith.constant 0 : i32
    %c0_i32_0 = arith.constant 0 : i32
    %c0_i32_1 = arith.constant 0 : i32
    %c0_i32_2 = arith.constant 0 : i32
    return %c0_i32, %c0_i32_0, %c0_i32_1 : i32, i32, i32
  }
  func.func @transform_2(%arg0: i32, %arg1: i32) -> (i32, i32) {
    %c0_i32 = arith.constant 0 : i32
    %c0_i32_0 = arith.constant 0 : i32
    return %arg0, %c0_i32 : i32, i32
  }
  func.func @transform_3(%arg0: i32, %arg1: i32) -> (i32, i32, i32) {
    %c0_i32 = arith.constant 0 : i32
    %c0_i32_0 = arith.constant 0 : i32
    return %arg1, %arg0, %c0_i32 : i32, i32, i32
  }
}

</mosaic_0001>

<bundles_post_ra>
// kernel: tpu_custom_call.1
= control target key start
LH: loop header
LB: loop body
LE: loop exit
PB: predicated region body
PF: predicated region fallthrough
CT: control target
= control target key end

     0   :  { %8 = vsyncpa [#allocation3], 0  ;;  %s2403_s0 = inlined_call_operand.vmem [shape: f32[4,96,7], index: 0, kind: input, shape index: {}]   ;;  %s2404_s1 = inlined_call_operand.vmem [shape: f32[3,7,128], index: 1, kind: input, shape index: {}]   ;;  %s2405_s2 = inlined_call_operand.vmem [shape: f32[96,128], index: 2, kind: input, shape index: {}]   ;;  %s2406_s3 = inlined_call_operand.hbm [shape: f32[4,96,128], index: 3, kind: output, shape index: {}]  }
   0x1   :  { %10 = vsyncpa [#allocation3 + $0x1], 0  ;;  %s1776_s12 = smov 0   ;;  %s1778_s13 = smov 0  }
   0x2   :  { %s1780_s14 = smov 0   ;;  %s1782_s15 = smov 0  }
   0x3   :  { %s1784_s16 = smov 0   ;;  %s1786_s17 = smov 0  }
   0x4 LB: > { %s1334_s18 = sadd.s32 4294967295, %s1751_s17   ;;  %s1335_s19 = sadd.s32 4294967294, %s1751_s17   ;;  %s1751_s17 = sphi %s1786_s17, %s16_s17   ;;  %s1747_s16 = sphi %s1784_s16, %s2413_s16   ;;  %s1743_s15 = sphi %s1782_s15, %s2412_s15   ;;  %s1739_s14 = sphi %s1780_s14, %s2411_s14   ;;  %s1735_s13 = sphi %s1778_s13, %s2410_s13   ;;  %s1731_s12 = sphi %s1776_s12, %s2409_s12  }
   0x5   : > { %s25_s20 = sadd.s32 1, %s1747_s16  ;;  %s112_s21 = sadd.s32 1, %s1739_s14 }
   0x6   : > { %p26_p0 = scmp.ge.s32.totalorder %s25_s20, 2  ;;  %p122_p1 = scmp.ne.s32.totalorder %s1739_s14, %s1735_s13 }
   0x7   : > { %p123_p2 = scmp.eq.s32.totalorder %s1334_s18, 1  ;;  %p128_p3 = scmp.ne.s32.totalorder %s1735_s13, %s1731_s12 }
   0x8   : > { %s2415_s20 = smov (%p26_p0, %s25_s20), 0  ;;  %p129_p5 = scmp.eq.s32.totalorder %s1335_s19, 1 }
   0x9   : > { %p1816_p4 = por %p123_p2, %p122_p1  ;;  %s107_s23 = ssub.s32 %s1747_s16, %s2415_s20 }
   0xa   : > { %p1339_p6 = scmp.ge.s32.totalorder %s1751_s17, 1  ;;  %p110_p7 = scmp.eq.s32.totalorder %s107_s23, 0 }
   0xb   : > { %p1823_p8 = por %p129_p5, %p128_p3  ;;  %p174_p9 = scmp.lt.s32.totalorder %s1751_s17, 3 }
   0xc   : > { %s1829_s25 = scalar_select %p110_p7, %s1739_s14, %s112_s21  }
   0xd   : > { %p175_p10 = pnand %p1339_p6, %p174_p9 }
   0xe   : > { %s1340_s28 = sshll.u32 (!%p175_p10), %s1743_s15, 1  ;;  %s205_s10 = sand.u32 (!%p175_p10), 1, %s1735_s13  }
   0xf   : > { %178 = sbr.rel (%p175_p10) target bundleno = 310 (0x136), region = 32  ;;  %p210_p11 = scmp.lt.s32.totalorder (!%p175_p10), %s1340_s28, 3 }
  0x10   : > { %s1615_s11 = smul.u32 (!%p175_p10), 192, %s205_s10  ;;  %s1753_s18 = smov (!%p175_p10), [#allocation2]  }
  0x11   : > { %s1617_s5 = smul.u32 (!%p175_p10), 3072, %s1743_s15  ;;  %s2358_s15 = scalar_lea.sflag (!%p175_p10), [#allocation3], %s205_s10 }
  0x12   : > { %s1679_s19 = sshll.u32 (!%p175_p10), %s1753_s18, 4  ;;  %s1680_s19 = int_to_ptr.vmem [resolvable:$false] %s1679_s19 }
  0x13   : > { %s1681_s21 = scalar_lea.vmem (!%p175_p10), %s1680_s19, 6144 }
  0x14   : > { %v1342_v0 = vld [vmem:[%s2404_s1 + $0x8] sm:$0x7f]  ;;  %vm428_vm0 = vcmask 1046528   ;;  %v352_v1 = vld [vmem:[%s2404_s1] sm:$0x7f]  ;;  %s2417_s28 = smov (!%p210_p11, %s1340_s28), 3  ;;  %v276_v17 = vlaneseq }
  0x15   : > { %1613 = vmatprep.subr.msk.mxu1 %vm428_vm0, %v1342_v0  ;;  %1499 = vmatprep.subr.msk.mxu0 %vm428_vm0, %v1342_v0  ;;  %v1393_v2 = vld [vmem:[%s2404_s1 + $0x10] sm:$0x7f]  ;;  %s1616_s6 = smul.u32 96, %s2417_s28  ;;  %vm355_vm1 = vcmask 56320   ;;  %s2237_s28 = scalar_lea.vmem [#allocation2], %s1615_s11 }
  0x16   : > { %1614 = vmatpush3.msk.msra.mxu1 %vm428_vm0, %v1342_v0  ;;  %1500 = vmatpush3.msk.msra.mxu0 %vm428_vm0, %v1342_v0  ;;  %v1939_v23 = vshrl.u32 %v276_v17, 7 }
  0x17   : > { %1537 = vmatprep.subr.msk.mxu1 %vm428_vm0, %v352_v1  ;;  %1575 = vmatprep.subr.msk.mxu0 %vm428_vm0, %v1393_v2  ;;  %s1850_s9 = scalar_lea.vmem %s2403_s0, %s1616_s6  ;;  %s1240_s6 = sshll.u32 %s2237_s28, 4  ;;  %s2351_s6 = int_to_ptr.vmem [resolvable:$true] %s1240_s6 }
  0x18   : > { %v1853_v3 = vld [vmem:[%s1850_s9] sm:$0xff]  ;;  %v1859_v5 = vld [vmem:[%s1850_s9 + $0x8] sm:$0xff]  ;;  %v1869_v7 = vld [vmem:[%s1850_s9 + $0x10] sm:$0xff]  ;;  %vm278_vm2 = vcmp.lt.s32.totalorder %v1939_v23, 1  ;;  %vm327_vm3 = vcmp.lt.s32.totalorder %v1939_v23, 7  ;;  %s1675_s11 = scalar_lea.vmem %s2351_s6, 3072  ;;  %p1682_p1 = scmp.lt.s32.totalorder %s2351_s6, %s1680_s19 }
  0x19   : > { %v1856_v4 = vld [vmem:[%s1850_s9 + $0x60] sm:$0xff]  ;;  %1501 = vmatprep.mubr.msk.f32.mxu0 %vm355_vm1, %v1853_v3  ;;  %v1866_v6 = vld [vmem:[%s1850_s9 + $0x68] sm:$0xff]  ;;  %v1876_v8 = vld [vmem:[%s1850_s9 + $0x70] sm:$0xff]  ;;  %v252_v26 = vrot.slane %v1853_v3, 7  ;;  %v303_v27 = vrot.slane %v1853_v3, 1  ;;  %v305_v28 = vrot.slane %v1859_v5, 1  ;;  %p1676_p12 = scmp.ne.s32.totalorder %s2351_s6, %s1675_s11  ;;  %p1683_p2 = scmp.lt.s32.totalorder %s1681_s21, %s1675_s11 }
  0x1a   : > { %1519 = vmatprep.mubr.msk.f32.mxu1 %vm355_vm1, %v1856_v4  ;;  %1502 = vmatmul.mubr.msk.f32.vlgmr.msra.gmra.mxu0 %vm355_vm1, %v1859_v5  ;;  %v1881_v9 = vld [vmem:[%s1850_s9 + $0x18] sm:$0xff]  ;;  %v1891_v11 = vld [vmem:[%s1850_s9 + $0x20] sm:$0xff]  ;;  %v1905_v13 = vld [vmem:[%s1850_s9 + $0x28] sm:$0xff]  ;;  %v254_v32 = vrot.slane %v1859_v5, 7  ;;  %v307_v33 = vrot.slane %v1869_v7, 1  ;;  %v256_v35 = vrot.slane %v1869_v7, 7 }
  0x1b   : > { %1520 = vmatmul.mubr.msk.f32.vlgmr.msra.gmra.mxu1 %vm355_vm1, %v1866_v6  ;;  %1576 = vmatpush3.msk.msra.mxu0 %vm428_vm0, %v1393_v2  ;;  %v1884_v10 = vld [vmem:[%s1850_s9 + $0x78] sm:$0xff]  ;;  %v1894_v12 = vld [vmem:[%s1850_s9 + $0x80] sm:$0xff]  ;;  %v1908_v14 = vld [vmem:[%s1850_s9 + $0x88] sm:$0xff]  ;;  %v309_v36 = vrot.slane %v1881_v9, 1  ;;  %v348_v38 = vsel %vm327_vm3, %v303_v27, %v305_v28  ;;  %v258_v39 = vrot.slane %v1881_v9, 7  ;;  %v311_v40 = vrot.slane %v1891_v11, 1  ;;  %p1677_p13 = pnand %p1676_p12, %p1816_p4  ;;  %p1684_p3 = por %p1683_p2, %p1682_p1 }
  0x1c   : > { %1538 = vmatpush3.msk.msra.mxu1 %vm428_vm0, %v352_v1  ;;  %1504 = vmatprep.mubr.msk.f32.mxu0 %vm355_vm1, %v1869_v7  ;;  %v1911_v15 = vld [vmem:[%s1850_s9 + $0x30] sm:$0xff]  ;;  %v1925_v18 = vld [vmem:[%s1850_s9 + $0x38] sm:$0xff]  ;;  %v1931_v20 = vld [vmem:[%s1850_s9 + $0x40] sm:$0xff]  ;;  %v299_v41 = vsel %vm278_vm2, %v252_v26, %v254_v32  ;;  %v346_v42 = vsel %vm327_vm3, %v305_v28, %v307_v33  ;;  %v260_v43 = vrot.slane %v1891_v11, 7  ;;  %v313_v44 = vrot.slane %v1905_v13, 1 }
  0x1d   : > { %1522 = vmatprep.mubr.msk.f32.mxu1 %vm355_vm1, %v1876_v8  ;;  %v1914_v16 = vld [vmem:[%s1850_s9 + $0x90] sm:$0xff]  ;;  %v1928_v19 = vld [vmem:[%s1850_s9 + $0x98] sm:$0xff]  ;;  %v1934_v21 = vld [vmem:[%s1850_s9 + $0xa0] sm:$0xff]  ;;  %v297_v45 = vsel %vm278_vm2, %v254_v32, %v256_v35  ;;  %v344_v46 = vsel %vm327_vm3, %v307_v33, %v309_v36  ;;  %v262_v47 = vrot.slane %v1905_v13, 7  ;;  %v315_v48 = vrot.slane %v1911_v15, 1  ;;  %p1678_p0 = pneg %p1677_p13 }
  0x1e   : > { %1505 = vmatmul.mubr.msk.f32.gmra.mxu0 %vm355_vm1, %v1881_v9  ;;  %v1937_v22 = vld [vmem:[%s1850_s9 + $0x58] sm:$0xff]  ;;  %v1950_v24 = vld [vmem:[%s1850_s9 + $0x48] sm:$0xff]  ;;  %v1959_v29 = vld [vmem:[%s1850_s9 + $0x50] sm:$0xff]  ;;  %v295_v49 = vsel %vm278_vm2, %v256_v35, %v258_v39  ;;  %v342_v50 = vsel %vm327_vm3, %v309_v36, %v311_v40  ;;  %v264_v51 = vrot.slane %v1911_v15, 7  ;;  %v317_v52 = vrot.slane %v1925_v18, 1 }
  0x1f   : > { %1523 = vmatmul.mubr.msk.f32.gmra.mxu1 %vm355_vm1, %v1884_v10  ;;  %1507 = vmatprep.mubr.msk.f32.mxu0 %vm355_vm1, %v1891_v11  ;;  %v1953_v25 = vld [vmem:[%s1850_s9 + $0xa8] sm:$0xff]  ;;  %v1962_v30 = vld [vmem:[%s1850_s9 + $0xb0] sm:$0xff]  ;;  %v274_v31 = vrot.slane %v1937_v22, 7  ;;  %v1978_v34 = vld [vmem:[%s1850_s9 + $0xb8] sm:$0xff]  ;;  %v293_v53 = vsel %vm278_vm2, %v258_v39, %v260_v43  ;;  %v340_v54 = vsel %vm327_vm3, %v311_v40, %v313_v44  ;;  %v266_v55 = vrot.slane %v1925_v18, 7  ;;  %s2349_s9 = scalar_lea.hbm %s2406_s3, %s1617_s5  ;;  %p1685_p5 = pnand %p1684_p3, %p1678_p0 }
  0x20   : > { %1525 = vmatprep.mubr.msk.f32.mxu1 %vm355_vm1, %v1894_v12  ;;  %v319_v56 = vrot.slane %v1931_v20, 1  ;;  %v291_v57 = vsel %vm278_vm2, %v260_v43, %v262_v47  ;;  %v338_v58 = vsel %vm327_vm3, %v313_v44, %v315_v48  ;;  %v268_v59 = vrot.slane %v1931_v20, 7 }
  0x21   : > { %v301_v37 = vsel %vm278_vm2, %v274_v31, %v252_v26  ;;  %v321_v60 = vrot.slane %v1950_v24, 1  ;;  %v289_v61 = vsel %vm278_vm2, %v262_v47, %v264_v51  ;;  %v336_v62 = vsel %vm327_vm3, %v315_v48, %v317_v52 }
  0x22   : > { %1508 = vmatmul.mubr.msk.f32.gmra.mxu0 %vm355_vm1, %v1905_v13  ;;  %v270_v63 = vrot.slane %v1950_v24, 7  ;;  %v323_v0 = vrot.slane %v1959_v29, 1  ;;  %v287_v1 = vsel %vm278_vm2, %v264_v51, %v266_v55  ;;  %v334_v2 = vsel %vm327_vm3, %v317_v52, %v319_v56 }
  0x23   : > { %1526 = vmatmul.mubr.msk.f32.gmra.mxu1 %vm355_vm1, %v1908_v14  ;;  %1510 = vmatprep.mubr.msk.f32.mxu0 %vm355_vm1, %v1911_v15  ;;  %v272_v5 = vrot.slane %v1959_v29, 7  ;;  %v325_v7 = vrot.slane %v1937_v22, 1  ;;  %v285_v9 = vsel %vm278_vm2, %v266_v55, %v268_v59  ;;  %v332_v11 = vsel %vm327_vm3, %v319_v56, %v321_v60 }
  0x24   : > { %1528 = vmatprep.mubr.msk.f32.mxu1 %vm355_vm1, %v1914_v16  ;;  %v253_v13 = vrot.slane %v1856_v4, 7  ;;  %v304_v15 = vrot.slane %v1856_v4, 1  ;;  %v283_v17 = vsel %vm278_vm2, %v268_v59, %v270_v63  ;;  %v308_v32 = vrot.slane %v1876_v8, 1 }
  0x25   : > { %v281_v26 = vsel %vm278_vm2, %v270_v63, %v272_v5  ;;  %v328_v28 = vsel %vm327_vm3, %v323_v0, %v325_v7  ;;  %v279_v33 = vsel %vm278_vm2, %v272_v5, %v274_v31  ;;  %v350_v35 = vsel %vm327_vm3, %v325_v7, %v303_v27 }
  0x26   : > { %1511 = vmatmul.mubr.msk.f32.gmra.mxu0 %vm355_vm1, %v1925_v18  ;;  %v330_v18 = vsel %vm327_vm3, %v321_v60, %v323_v0  ;;  %v257_v36 = vrot.slane %v1876_v8, 7  ;;  %v259_v3 = vrot.slane %v1884_v10, 7  ;;  %v312_v8 = vrot.slane %v1894_v12, 1 }
  0x27   : > { %1529 = vmatmul.mubr.msk.f32.gmra.mxu1 %vm355_vm1, %v1928_v19  ;;  %1513 = vmatprep.mubr.msk.f32.mxu0 %vm355_vm1, %v1931_v20  ;;  %v306_v20 = vrot.slane %v1866_v6, 1  ;;  %v314_v39 = vrot.slane %v1908_v14, 1  ;;  %v265_v44 = vrot.slane %v1914_v16, 7  ;;  %v267_v47 = vrot.slane %v1928_v19, 7 }
  0x28   : > { %1531 = vmatprep.mubr.msk.f32.mxu1 %vm355_vm1, %v1934_v21  ;;  %v320_v48 = vrot.slane %v1934_v21, 1  ;;  %v322_v51 = vrot.slane %v1953_v25, 1  ;;  %v273_v56 = vrot.slane %v1962_v30, 7 }
  0x29   : > { %v347_v31 = vsel %vm327_vm3, %v306_v20, %v308_v32 }
  0x2a   : > { %1514 = vmatmul.mubr.msk.f32.gmra.mxu0 %vm355_vm1, %v1950_v24  ;;  %v275_v24 = vrot.slane %v1978_v34, 7 }
  0x2b   : > { %1532 = vmatmul.mubr.msk.f32.gmra.mxu1 %vm355_vm1, %v1953_v25  ;;  %1516 = vmatprep.mubr.msk.f32.mxu0 %vm355_vm1, %v1959_v29  ;;  %v255_v29 = vrot.slane %v1866_v6, 7  ;;  %v310_v6 = vrot.slane %v1884_v10, 1 }
  0x2c   : > { %1534 = vmatprep.mubr.msk.f32.mxu1 %vm355_vm1, %v1962_v30 }
  0x2d   : > { %v300_v27 = vsel %vm278_vm2, %v253_v13, %v255_v29  ;;  %v298_v40 = vsel %vm278_vm2, %v255_v29, %v257_v36  ;;  %v345_v10 = vsel %vm327_vm3, %v308_v32, %v310_v6  ;;  %v343_v43 = vsel %vm327_vm3, %v310_v6, %v312_v8 }
  0x2e   : > { %1517 = vmatmul.mubr.msk.f32.gmra.mxu0 %vm355_vm1, %v1937_v22  ;;  %v349_v22 = vsel %vm327_vm3, %v304_v15, %v306_v20 }
  0x2f   : > { %1535 = vmatmul.mubr.msk.f32.gmra.mxu1 %vm355_vm1, %v1978_v34  ;;  %1577 = vmatprep.mubr.msk.f32.mxu0 %vm355_vm1, %v348_v38  ;;  %v261_v38 = vrot.slane %v1894_v12, 7  ;;  %v296_v12 = vsel %vm278_vm2, %v257_v36, %v259_v3 }
  0x30   : > { %1539 = vmatprep.mubr.msk.f32.mxu1 %vm355_vm1, %v301_v37  ;;  %v302_v37 = vsel %vm278_vm2, %v275_v24, %v253_v13 }
  0x32   : > { %1578 = vmatmul.mubr.msk.f32.vlgmr.msra.gmra.mxu0 %vm355_vm1, %v346_v42  ;;  %v316_v42 = vrot.slane %v1914_v16, 1 }
  0x33   : > { %1540 = vmatmul.mubr.msk.f32.vlgmr.msra.gmra.mxu1 %vm355_vm1, %v299_v41  ;;  %1580 = vmatprep.mubr.msk.f32.mxu0 %vm355_vm1, %v344_v46  ;;  %v263_v41 = vrot.slane %v1908_v14, 7  ;;  %v294_v46 = vsel %vm278_vm2, %v259_v3, %v261_v38  ;;  %v341_v14 = vsel %vm327_vm3, %v312_v8, %v314_v39  ;;  %v2224_v8 = vld [vmem:[%s2405_s2 + $0x8] sm:$0xff] }
  0x34   : > { %1542 = vmatprep.mubr.msk.f32.mxu1 %vm355_vm1, %v297_v45  ;;  %v318_v45 = vrot.slane %v1928_v19, 1 }
  0x35   : > { %v292_v16 = vsel %vm278_vm2, %v261_v38, %v263_v41  ;;  %v290_v52 = vsel %vm278_vm2, %v263_v41, %v265_v44 }
  0x36   : > { %1581 = vmatmul.mubr.msk.f32.gmra.mxu0 %vm355_vm1, %v342_v50  ;;  %v269_v50 = vrot.slane %v1934_v21, 7  ;;  %v337_v19 = vsel %vm327_vm3, %v316_v42, %v318_v45  ;;  %v288_v21 = vsel %vm278_vm2, %v265_v44, %v267_v47  ;;  %v335_v55 = vsel %vm327_vm3, %v318_v45, %v320_v48  ;;  %v2235_v44 = vld [vmem:[%s2405_s2 + $0x18] sm:$0xff] }
  0x37   : > { %1543 = vmatmul.mubr.msk.f32.gmra.mxu1 %vm355_vm1, %v295_v49  ;;  %1583 = vmatprep.mubr.msk.f32.mxu0 %vm355_vm1, %v340_v54  ;;  %v339_v49 = vsel %vm327_vm3, %v314_v39, %v316_v42  ;;  %v324_v54 = vrot.slane %v1962_v30, 1 }
  0x38   : > { %1545 = vmatprep.mubr.msk.f32.mxu1 %vm355_vm1, %v293_v53  ;;  %v271_v53 = vrot.slane %v1953_v25, 7  ;;  %v333_v25 = vsel %vm327_vm3, %v320_v48, %v322_v51 }
  0x39   : > { %v331_v30 = vsel %vm327_vm3, %v322_v51, %v324_v54 }
  0x3a   : > { %1584 = vmatmul.mubr.msk.f32.gmra.mxu0 %vm355_vm1, %v338_v58  ;;  %v286_v58 = vsel %vm278_vm2, %v267_v47, %v269_v50  ;;  %v284_v59 = vsel %vm278_vm2, %v269_v50, %v271_v53  ;;  %v282_v60 = vsel %vm278_vm2, %v271_v53, %v273_v56  ;;  %v2251_v53 = vld [vmem:[%s2405_s2 + $0x28] sm:$0xff] }
  0x3b   : > { %1546 = vmatmul.mubr.msk.f32.gmra.mxu1 %vm355_vm1, %v291_v57  ;;  %1586 = vmatprep.mubr.msk.f32.mxu0 %vm355_vm1, %v336_v62  ;;  %v326_v57 = vrot.slane %v1978_v34, 1  ;;  %v280_v62 = vsel %vm278_vm2, %v273_v56, %v275_v24 }
  0x3c   : > { %1548 = vmatprep.mubr.msk.f32.mxu1 %vm355_vm1, %v289_v61 }
  0x3d   : > { %v329_v61 = vsel %vm327_vm3, %v324_v54, %v326_v57  ;;  %v351_v63 = vsel %vm327_vm3, %v326_v57, %v304_v15 }
  0x3e   : > { %1587 = vmatmul.mubr.msk.f32.gmra.mxu0 %vm355_vm1, %v334_v2 }
  0x3f   : > { %1549 = vmatmul.mubr.msk.f32.gmra.mxu1 %vm355_vm1, %v287_v1  ;;  %1589 = vmatprep.mubr.msk.f32.mxu0 %vm355_vm1, %v332_v11 }
  0x40   : > { %1551 = vmatprep.mubr.msk.f32.mxu1 %vm355_vm1, %v285_v9 }
  0x42   : > { %1590 = vmatmul.mubr.msk.f32.gmra.mxu0 %vm355_vm1, %v330_v18 }
  0x43   : > { %1552 = vmatmul.mubr.msk.f32.gmra.mxu1 %vm355_vm1, %v283_v17  ;;  %1592 = vmatprep.mubr.msk.f32.mxu0 %vm355_vm1, %v328_v28 }
  0x44   : > { %1554 = vmatprep.mubr.msk.f32.mxu1 %vm355_vm1, %v281_v26 }
  0x46   : > { %1593 = vmatmul.mubr.msk.f32.gmra.mxu0 %vm355_vm1, %v350_v35 }
  0x47   : > { %1555 = vmatmul.mubr.msk.f32.gmra.mxu1 %vm355_vm1, %v279_v33  ;;  %1595 = vmatprep.mubr.msk.f32.mxu0 %vm355_vm1, %v349_v22 }
  0x48   : > { %1557 = vmatprep.mubr.msk.f32.mxu1 %vm355_vm1, %v302_v37 }
  0x4a   : > { %1596 = vmatmul.mubr.msk.f32.gmra.mxu0 %vm355_vm1, %v347_v31 }
  0x4b   : > { %1558 = vmatmul.mubr.msk.f32.gmra.mxu1 %vm355_vm1, %v300_v27  ;;  %1598 = vmatprep.mubr.msk.f32.mxu0 %vm355_vm1, %v345_v10 }
  0x4c   : > { %1560 = vmatprep.mubr.msk.f32.mxu1 %vm355_vm1, %v298_v40  ;;  %v2229_v40 = vld [vmem:[%s2405_s2] sm:$0xff] }
  0x4e   : > { %1599 = vmatmul.mubr.msk.f32.gmra.mxu0 %vm355_vm1, %v343_v43 }
  0x4f   : > { %1561 = vmatmul.mubr.msk.f32.gmra.mxu1 %vm355_vm1, %v296_v12  ;;  %1601 = vmatprep.mubr.msk.f32.mxu0 %vm355_vm1, %v341_v14 }
  0x50   : > { %1563 = vmatprep.mubr.msk.f32.mxu1 %vm355_vm1, %v294_v46 }
  0x52   : > { %1602 = vmatmul.mubr.msk.f32.gmra.mxu0 %vm355_vm1, %v339_v49 }
  0x53   : > { %1564 = vmatmul.mubr.msk.f32.gmra.mxu1 %vm355_vm1, %v292_v16  ;;  %1604 = vmatprep.mubr.msk.f32.mxu0 %vm355_vm1, %v337_v19  ;;  %v2244_v16 = vld [vmem:[%s2405_s2 + $0x10] sm:$0xff] }
  0x54   : > { %1566 = vmatprep.mubr.msk.f32.mxu1 %vm355_vm1, %v290_v52 }
  0x56   : > { %1605 = vmatmul.mubr.msk.f32.gmra.mxu0 %vm355_vm1, %v335_v55 }
  0x57   : > { %1567 = vmatmul.mubr.msk.f32.gmra.mxu1 %vm355_vm1, %v288_v21  ;;  %1607 = vmatprep.mubr.msk.f32.mxu0 %vm355_vm1, %v333_v25 }
  0x58   : > { %1569 = vmatprep.mubr.msk.f32.mxu1 %vm355_vm1, %v286_v58  ;;  %v2258_v58 = vld [vmem:[%s2405_s2 + $0x20] sm:$0xff] }
  0x5a   : > { %1608 = vmatmul.mubr.msk.f32.gmra.mxu0 %vm355_vm1, %v331_v30 }
  0x5b   : > { %1570 = vmatmul.mubr.msk.f32.gmra.mxu1 %vm355_vm1, %v284_v59  ;;  %1610 = vmatprep.mubr.msk.f32.mxu0 %vm355_vm1, %v329_v61 }
  0x5c   : > { %1572 = vmatprep.mubr.msk.f32.mxu1 %vm355_vm1, %v282_v60 }
  0x5e   : > { %1611 = vmatmul.mubr.msk.f32.gmra.mxu0 %vm355_vm1, %v351_v63 }
  0x5f   : > { %1573 = vmatmul.mubr.msk.f32.gmra.mxu1 %vm355_vm1, %v280_v62  ;;  %v2265_v62 = vld [vmem:[%s2405_s2 + $0x38] sm:$0xff] }
  0xda   : > { %v1503_v0 = vpop.f32.mrf.mxu0 }
  0xdb   : > { %v2186_v1 = vpop.f32.mrf.mxu1 }
  0xdc   : > { %v498_v2 = vpop.f32.mrf.mxu0 }
  0xdd   : > { %v2188_v5 = vpop.f32.mrf.mxu1 }
  0xde   : > { %v1506_v7 = vpop.f32.mrf.mxu0 }
  0xdf   : > { %v2190_v34 = vpop.f32.mrf.mxu1 }
  0xe0   : > { %v508_v9 = vpop.f32.mrf.mxu0 }
  0xe1   : > { %v2192_v11 = vpop.f32.mrf.mxu1 }
  0xe2   : > { %v1509_v4 = vpop.f32.mrf.mxu0 }
  0xe3   : > { %v2194_v23 = vpop.f32.mrf.mxu1 }
  0xe4   : > { %v518_v13 = vpop.f32.mrf.mxu0 }
  0xe5   : > { %v2196_v15 = vpop.f32.mrf.mxu1 }
  0xe6   : > { %v1512_v17 = vpop.f32.mrf.mxu0 }
  0xe7   : > { %v2198_v18 = vpop.f32.mrf.mxu1 }
  0xe8   : > { %v528_v20 = vpop.f32.mrf.mxu0 }
  0xe9   : > { %v2200_v24 = vpop.f32.mrf.mxu1 }
  0xea   : > { %v2202_v26 = vpop.f32.mrf.mxu0 }
  0xeb   : > { %v2204_v28 = vpop.f32.mrf.mxu1 }
  0xec   : > { %v2206_v29 = vpop.f32.mrf.mxu0 }
  0xed   : > { %v2208_v32 = vpop.f32.mrf.mxu1 }
  0xee   : > { %v2210_v33 = vpop.f32.mrf.mxu0 }
  0xef   : > { %v2212_v35 = vpop.f32.mrf.mxu1 }
  0xf0   : > { %v2215_v36 = vpop.f32.mrf.mxu0 }
  0xf1   : > { %v2217_v6 = vpop.f32.mrf.mxu1 }
  0xf2   : > { %v1579_v22 = vpop.f32.mrf.mxu0 }
  0xf3   : > { %v1541_v37 = vpop.f32.mrf.mxu1 }
  0xf4   : > { %v764_v3 = vadd.f32 %v1541_v37, %v1503_v0  ;;  %v1020_v31 = vpop.f32.mrf.mxu0 }
  0xf5   : > { %v758_v27 = vpop.f32.mrf.mxu1 }
  0xf6   : > { %v1140_v38 = vadd.f32 %v1579_v22, %v764_v3  ;;  %v759_v39 = vadd.f32 %v758_v27, %v498_v2  ;;  %v1582_v41 = vpop.f32.mrf.mxu0  ;;  %v2280_v27 = vld [vmem:[%s2405_s2 + $0x48] sm:$0xff] }
  0xf7   : > { %v1544_v10 = vpop.f32.mrf.mxu1 }
  0xf8   : > { %v1176_v42 = vadd.f32 %v2224_v8, %v1140_v38  ;;  %v1139_v12 = vadd.f32 %v1020_v31, %v759_v39  ;;  %v774_v43 = vadd.f32 %v1544_v10, %v1506_v7  ;;  %v1030_v46 = vpop.f32.mrf.mxu0 }
  0xf9   : > { %v768_v45 = vpop.f32.mrf.mxu1 }
  0xfa   : > { %1200 = vst [vmem:[%s2237_s28 + $0x8] sm:$0xff] %v1176_v42  ;;  %v1175_v14 = vadd.f32 %v2229_v40, %v1139_v12  ;;  %v1142_v47 = vadd.f32 %v1582_v41, %v774_v43  ;;  %v769_v48 = vadd.f32 %v768_v45, %v508_v9  ;;  %v1585_v50 = vpop.f32.mrf.mxu0  ;;  %v2288_v41 = vld [vmem:[%s2405_s2 + $0x40] sm:$0xff] }
  0xfb   : > { %v1547_v49 = vpop.f32.mrf.mxu1 }
  0xfc   : > { %1199 = vst [vmem:[%s2237_s28] sm:$0xff] %v1175_v14  ;;  %v1178_v51 = vadd.f32 %v2235_v44, %v1142_v47  ;;  %v1141_v52 = vadd.f32 %v1030_v46, %v769_v48  ;;  %v784_v19 = vadd.f32 %v1547_v49, %v1509_v4  ;;  %v1040_v21 = vpop.f32.mrf.mxu0  ;;  %v2272_v4 = vld [vmem:[%s2405_s2 + $0x30] sm:$0xff]  ;;  %v2296_v46 = vld [vmem:[%s2405_s2 + $0x58] sm:$0xff] }
  0xfd   : > { %v778_v54 = vpop.f32.mrf.mxu1 }
  0xfe   : > { %1202 = vst [vmem:[%s2237_s28 + $0x18] sm:$0xff] %v1178_v51  ;;  %v1177_v55 = vadd.f32 %v2244_v16, %v1141_v52  ;;  %v1144_v56 = vadd.f32 %v1585_v50, %v784_v19  ;;  %v779_v57 = vadd.f32 %v778_v54, %v518_v13  ;;  %v1588_v59 = vpop.f32.mrf.mxu0  ;;  %v2304_v50 = vld [vmem:[%s2405_s2 + $0x50] sm:$0xff] }
  0xff   : > { %v1550_v25 = vpop.f32.mrf.mxu1 }
 0x100   : > { %1201 = vst [vmem:[%s2237_s28 + $0x10] sm:$0xff] %v1177_v55  ;;  %v1180_v30 = vadd.f32 %v2251_v53, %v1144_v56  ;;  %v1143_v60 = vadd.f32 %v1040_v21, %v779_v57  ;;  %v794_v61 = vadd.f32 %v1550_v25, %v1512_v17  ;;  %v1050_v0 = vpop.f32.mrf.mxu0 }
 0x101   : > { %v788_v63 = vpop.f32.mrf.mxu1 }
 0x102   : > { %1204 = vst [vmem:[%s2237_s28 + $0x28] sm:$0xff] %v1180_v30  ;;  %v1179_v2 = vadd.f32 %v2258_v58, %v1143_v60  ;;  %v1146_v7 = vadd.f32 %v1588_v59, %v794_v61  ;;  %v789_v9 = vadd.f32 %v788_v63, %v528_v20  ;;  %v1591_v17 = vpop.f32.mrf.mxu0 }
 0x103   : > { %v1553_v13 = vpop.f32.mrf.mxu1 }
 0x104   : > { %1203 = vst [vmem:[%s2237_s28 + $0x20] sm:$0xff] %v1179_v2  ;;  %v1182_v37 = vadd.f32 %v2265_v62, %v1146_v7  ;;  %v1145_v22 = vadd.f32 %v1050_v0, %v789_v9  ;;  %v804_v3 = vadd.f32 %v1553_v13, %v2202_v26  ;;  %v1060_v31 = vpop.f32.mrf.mxu0 }
 0x105   : > { %v798_v20 = vpop.f32.mrf.mxu1 }
 0x106   : > { %1206 = vst [vmem:[%s2237_s28 + $0x38] sm:$0xff] %v1182_v37  ;;  %v1181_v38 = vadd.f32 %v2272_v4, %v1145_v22  ;;  %v1148_v39 = vadd.f32 %v1591_v17, %v804_v3  ;;  %v799_v10 = vadd.f32 %v798_v20, %v2206_v29  ;;  %v1594_v42 = vpop.f32.mrf.mxu0 }
 0x107   : > { %v1556_v26 = vpop.f32.mrf.mxu1 }
 0x108   : > { %1205 = vst [vmem:[%s2237_s28 + $0x30] sm:$0xff] %v1181_v38  ;;  %v1184_v12 = vadd.f32 %v2280_v27, %v1148_v39  ;;  %v1147_v43 = vadd.f32 %v1060_v31, %v799_v10  ;;  %v814_v45 = vadd.f32 %v1556_v26, %v2210_v33  ;;  %v1070_v14 = vpop.f32.mrf.mxu0 }
 0x109   : > { %v808_v29 = vpop.f32.mrf.mxu1 }
 0x10a   : > { %1208 = vst [vmem:[%s2237_s28 + $0x48] sm:$0xff] %v1184_v12  ;;  %v1183_v47 = vadd.f32 %v2288_v41, %v1147_v43  ;;  %v1150_v48 = vadd.f32 %v1594_v42, %v814_v45  ;;  %v809_v49 = vadd.f32 %v808_v29, %v2215_v36  ;;  %v1597_v51 = vpop.f32.mrf.mxu0 }
 0x10b   : > { %v1559_v33 = vpop.f32.mrf.mxu1 }
 0x10c   : > { %1207 = vst [vmem:[%s2237_s28 + $0x40] sm:$0xff] %v1183_v47  ;;  %v1186_v52 = vadd.f32 %v2296_v46, %v1150_v48  ;;  %v1149_v19 = vadd.f32 %v1070_v14, %v809_v49  ;;  %v824_v54 = vadd.f32 %v1559_v33, %v2186_v1  ;;  %v1080_v55 = vpop.f32.mrf.mxu0 }
 0x10d   : > { %v818_v21 = vpop.f32.mrf.mxu1 }
 0x10e   : > { %1210 = vst [vmem:[%s2237_s28 + $0x58] sm:$0xff] %v1186_v52  ;;  %v1185_v36 = vadd.f32 %v2304_v50, %v1149_v19  ;;  %v1152_v56 = vadd.f32 %v1597_v51, %v824_v54  ;;  %v819_v57 = vadd.f32 %v818_v21, %v2188_v5  ;;  %v1600_v59 = vpop.f32.mrf.mxu0 }
 0x10f   : > { %v1562_v25 = vpop.f32.mrf.mxu1 }
 0x110   : > { %1209 = vst [vmem:[%s2237_s28 + $0x50] sm:$0xff] %v1185_v36  ;;  %v1188_v30 = vadd.f32 %v2224_v8, %v1152_v56  ;;  %v1151_v60 = vadd.f32 %v1080_v55, %v819_v57  ;;  %v834_v61 = vadd.f32 %v1562_v25, %v2190_v34  ;;  %v1090_v1 = vpop.f32.mrf.mxu0 }
 0x111   : > { %v828_v63 = vpop.f32.mrf.mxu1 }
 0x112   : > { %1212 = vst [vmem:[%s2237_s28 + $0x68] sm:$0xff] %v1188_v30  ;;  %v1187_v0 = vadd.f32 %v2229_v40, %v1151_v60  ;;  %v1154_v2 = vadd.f32 %v1600_v59, %v834_v61  ;;  %v829_v7 = vadd.f32 %v828_v63, %v2192_v11  ;;  %v1603_v5 = vpop.f32.mrf.mxu0 }
 0x113   : > { %v1565_v9 = vpop.f32.mrf.mxu1 }
 0x114   : > { %1211 = vst [vmem:[%s2237_s28 + $0x60] sm:$0xff] %v1187_v0  ;;  %v1190_v13 = vadd.f32 %v2235_v44, %v1154_v2  ;;  %v1153_v17 = vadd.f32 %v1090_v1, %v829_v7  ;;  %v844_v8 = vadd.f32 %v1565_v9, %v2194_v23  ;;  %v1100_v34 = vpop.f32.mrf.mxu0 }
 0x115   : > { %v838_v37 = vpop.f32.mrf.mxu1 }
 0x116   : > { %1214 = vst [vmem:[%s2237_s28 + $0x78] sm:$0xff] %v1190_v13  ;;  %v1189_v22 = vadd.f32 %v2244_v16, %v1153_v17  ;;  %v1156_v3 = vadd.f32 %v1603_v5, %v844_v8  ;;  %v839_v40 = vadd.f32 %v838_v37, %v2196_v15  ;;  %v1606_v11 = vpop.f32.mrf.mxu0 }
 0x117   : > { %v1568_v20 = vpop.f32.mrf.mxu1 }
 0x118   : > { %1213 = vst [vmem:[%s2237_s28 + $0x70] sm:$0xff] %v1189_v22  ;;  %v1192_v31 = vadd.f32 %v2251_v53, %v1156_v3  ;;  %v1155_v38 = vadd.f32 %v1100_v34, %v839_v40  ;;  %v854_v44 = vadd.f32 %v1568_v20, %v2198_v18  ;;  %v1110_v23 = vpop.f32.mrf.mxu0 }
 0x119   : > { %v848_v39 = vpop.f32.mrf.mxu1 }
 0x11a   : > { %1216 = vst [vmem:[%s2237_s28 + $0x88] sm:$0xff] %v1192_v31  ;;  %v1191_v10 = vadd.f32 %v2258_v58, %v1155_v38  ;;  %v1158_v26 = vadd.f32 %v1606_v11, %v854_v44  ;;  %v849_v16 = vadd.f32 %v848_v39, %v2200_v24  ;;  %v1609_v15 = vpop.f32.mrf.mxu0 }
 0x11b   : > { %v1571_v42 = vpop.f32.mrf.mxu1 }
 0x11c   : > { %1215 = vst [vmem:[%s2237_s28 + $0x80] sm:$0xff] %v1191_v10  ;;  %v1194_v12 = vadd.f32 %v2265_v62, %v1158_v26  ;;  %v1157_v53 = vadd.f32 %v1110_v23, %v849_v16  ;;  %v864_v43 = vadd.f32 %v1571_v42, %v2204_v28  ;;  %v1120_v45 = vpop.f32.mrf.mxu0 }
 0x11d   : > { %v858_v18 = vpop.f32.mrf.mxu1 }
 0x11e   : > { %1218 = vst [vmem:[%s2237_s28 + $0x98] sm:$0xff] %v1194_v12  ;;  %v1193_v58 = vadd.f32 %v2272_v4, %v1157_v53  ;;  %v1160_v29 = vadd.f32 %v1609_v15, %v864_v43  ;;  %v859_v24 = vadd.f32 %v858_v18, %v2208_v32  ;;  %v1612_v47 = vpop.f32.mrf.mxu0 }
 0x11f   : > { %v1574_v14 = vpop.f32.mrf.mxu1 }
 0x120   : > { %1217 = vst [vmem:[%s2237_s28 + $0x90] sm:$0xff] %v1193_v58  ;;  %v1196_v62 = vadd.f32 %v2280_v27, %v1160_v29  ;;  %v1159_v48 = vadd.f32 %v1120_v45, %v859_v24  ;;  %v874_v49 = vadd.f32 %v1574_v14, %v2212_v35  ;;  %v1130_v51 = vpop.f32.mrf.mxu0 }
 0x121   : > { %v868_v28 = vpop.f32.mrf.mxu1 }
 0x122   : > { %1220 = vst [vmem:[%s2237_s28 + $0xa8] sm:$0xff] %v1196_v62  ;;  %v1195_v4 = vadd.f32 %v2288_v41, %v1159_v48  ;;  %v1162_v33 = vadd.f32 %v1612_v47, %v874_v49  ;;  %v869_v32 = vadd.f32 %v868_v28, %v2217_v6 }
 0x124   : > { %1219 = vst [vmem:[%s2237_s28 + $0xa0] sm:$0xff] %v1195_v4  ;;  %v1198_v27 = vadd.f32 %v2296_v46, %v1162_v33  ;;  %v1161_v52 = vadd.f32 %v1130_v51, %v869_v32 }
 0x126   : > { %1222 = vst [vmem:[%s2237_s28 + $0xb8] sm:$0xff] %v1198_v27  ;;  %v1197_v35 = vadd.f32 %v2304_v50, %v1161_v52 }
 0x128   : > { %1221 = vst [vmem:[%s2237_s28 + $0xb0] sm:$0xff] %v1197_v35 }
 0x129   : > { %1688 = shalt.err (!%p1685_p5)
}
 0x12a   : > { %s1689_s10 = scalar_lea.hbm %s2349_s9, 3072  ;;  %s1693_s26 = scalar_lea.hbm %s2406_s3, 6144 }
 0x12b   : > { %p1690_p6 = scmp.ne.s32.totalorder %s2349_s9, %s1689_s10  ;;  %p1694_p10 = scmp.lt.s32.totalorder %s2349_s9, %s2406_s3 }
 0x12c   : > { %p1695_p11 = scmp.lt.s32.totalorder %s1693_s26, %s1689_s10 }
 0x12d   : > { %p1691_p7 = pnand %p1690_p6, %p1816_p4 }
 0x12e   : > { %p1696_p12 = por %p1695_p11, %p1694_p10 }
 0x12f   : > { %p1692_p9 = pneg %p1691_p7 }
 0x131   : > { %p1697_p13 = pnand %p1696_p12, %p1692_p9 }
 0x133   : > { %1700 = shalt.err (!%p1697_p13)
}
 0x134   : > { %s1754_s30 = smov 128   ;;  %s1755_s4 = smov 8  }
 0x135   : > { %1618 = dma.vmem_to_hbm [thread:$0]  (%p1816_p4), %s2351_s6, 3072, %s2349_s9, %s2358_s15, %s1754_s30, %s1754_s30, %s1755_s4  }
 0x136 PF: > { %p1624_p0 = scmp.ge.s32.totalorder %s1751_s17, 2  ;;  %s1255_s5 = sand.u32 1, %s1731_s12  }
 0x137   : > { %s1256_s7 = scalar_lea.sflag [#allocation3], %s1255_s5 }
 0x138   : > { %p1621_p1 = pnand %p1624_p0, %p1823_p8 }
 0x13a   : > { %p1622_p2 = pneg %p1621_p1 }
 0x13c   : > { %1726 = dma.done.wait (%p1622_p2), %s1256_s7, 3072  }
 0x13d   : > { %1728 = vsyncadd (%p1622_p2), %s1256_s7, 4294964224  ;;  %s16_s17 = sadd.s32 1, %s1751_s17   ;;  %s2409_s12 = smov %s1735_s13 }
 0x13e   : > { %p13_p3 = scmp.ge.s32.totalorder %s16_s17, 4   ;;  %s2410_s13 = smov %s1739_s14 }
 0x13f   : > { %s2411_s14 = smov %s1829_s25  ;;  %s2412_s15 = smov %s1747_s16 }
 0x140   : > { %s2413_s16 = smov %s2415_s20  ;;  %15 = sbr.rel (!%p13_p3) target bundleno = 4 (0x4), region = 72 }
 0x145   :  { %1261 = vsyncpa [#allocation3], 1 }
 0x146   :  { %1263 = vsyncpa [#allocation3 + $0x1], 1 }

</bundles_post_ra>
